<compile_context>
chip_gen: v7x
topology: tpu7x:2x2x1
jax: 0.10.0
libtpu: 0.0.40
codegen_flags: <defaults>
</compile_context>

<pallas_src>
import functools

import jax
import jax.numpy as jnp
from jax.experimental import pallas as pl
from jax.experimental.pallas import tpu as pltpu


def mlp_kernel(x_ref, w1_ref, b1_ref, w2_ref, b2_ref, out_ref):
    # fc_1 on the MXU: (TB, in_dim) @ (in_dim, h_dim) -> (TB, h_dim), f32 acc.
    h = jnp.dot(x_ref[...], w1_ref[...], preferred_element_type=jnp.float32)
    h = h + b1_ref[...]                       # (TB, h_dim) + (1, h_dim)
    h = jnp.maximum(h, 0.0)                   # ReLU
    # Dropout(p=0.0) is the identity in both train and eval -> no-op.

    # fc_2: output dim is 1, so skip the MXU entirely. Elementwise multiply by
    # the fc_2 weight row (VPU slot) + cross-lane sum (XLU slot), both of which
    # are otherwise idle here.
    z = jnp.sum(h * w2_ref[...], axis=-1, keepdims=True)   # (TB, 1)
    z = z + b2_ref[0, 0]                                    # scalar bias (SMEM)

    # Packed (TB, 2) output: col 0 = logit, col 1 = sigmoid(logit).
    out_ref[:, 0:1] = z.astype(out_ref.dtype)
    out_ref[:, 1:2] = jax.nn.sigmoid(z).astype(out_ref.dtype)


def mlp_forward(x, fc1_w, fc1_b, fc2_w, fc2_b, *, block_b=1024,
                cast_inputs_to_bf16=False):
    """Fused MLP forward.

    Args:
      x:      (B, in_dim) activations.
      fc1_w:  (h_dim, in_dim)  -- PyTorch fc_1.weight layout.
      fc1_b:  (h_dim,)
      fc2_w:  (1, h_dim)       -- PyTorch fc_2.weight layout.
      fc2_b:  (1,)
      block_b: batch tile size (rounded usage: multiples of 128).
      cast_inputs_to_bf16: cast x / fc1_w to bf16 for the fc_1 matmul
        (f32 accumulation; elementwise math stays f32). ~2x MXU / HBM win at
        scale on v5e/v6e/v7x; keep False when bit-accurate f32 is required.

    Returns:
      (logits, probs), each (B, 1) float32.
    """
    B, in_dim = x.shape
    h_dim = fc1_w.shape[0]

    # Layout plumbing (host side, weights only -- tiny).
    w1 = fc1_w.T                              # (in_dim, h_dim) for x @ w1
    w2_row = fc2_w.reshape(1, h_dim)          # fc_2 weight as a broadcast row
    b1_2d = fc1_b.reshape(1, h_dim)
    b2_2d = fc2_b.reshape(1, 1).astype(jnp.float32)

    out_dtype = jnp.float32
    if cast_inputs_to_bf16:
        x = x.astype(jnp.bfloat16)
        w1 = w1.astype(jnp.bfloat16)

    # Batch tiling: tile is a multiple of 128 lanes-worth of rows; pad B up.
    tb = min(block_b, pl.cdiv(B, 128) * 128)
    B_pad = pl.cdiv(B, tb) * tb
    if B_pad != B:
        x = jnp.pad(x, ((0, B_pad - B), (0, 0)))
    grid = (B_pad // tb,)

    out = pl.pallas_call(
        mlp_kernel,
        out_shape=jax.ShapeDtypeStruct((B_pad, 2), out_dtype),
        grid=grid,
        in_specs=[
            pl.BlockSpec((tb, in_dim), lambda i: (i, 0)),       # x: streamed
            pl.BlockSpec((in_dim, h_dim), lambda i: (0, 0)),    # w1: resident
            pl.BlockSpec((1, h_dim), lambda i: (0, 0)),         # b1: resident
            pl.BlockSpec((1, h_dim), lambda i: (0, 0)),         # w2 row: resident
            pl.BlockSpec(memory_space=pltpu.MemorySpace.SMEM),  # b2: SMEM scalar
        ],
        out_specs=pl.BlockSpec((tb, 2), lambda i: (i, 0)),
        compiler_params=pltpu.CompilerParams(
            dimension_semantics=("parallel",),   # shard batch tiles across TCs (v7x)
        ),
    )(x, w1, b1_2d, w2_row, b2_2d)

    logits = out[:B, 0:1]
    probs = out[:B, 1:2]
    return logits, probs


def xavier_normal(key, shape_out_in):
    # Matches torch.nn.init.xavier_normal_ on a (out, in) Linear weight.
    fan_out, fan_in = shape_out_in
    std = (2.0 / (fan_in + fan_out)) ** 0.5
    return std * jax.random.normal(key, shape_out_in, dtype=jnp.float32)


if __name__ == "__main__":
    key = jax.random.PRNGKey(0)
    k_x, k_w1, k_w2, k_b1, k_b2 = jax.random.split(key, 5)

    # Small but multi-tile: B=200 with block_b=128 -> grid of 2 (+ padding path).
    B, in_dim, h_dim = 200, 32, 128

    x = jax.random.normal(k_x, (B, in_dim), dtype=jnp.float32)

    # PyTorch layouts: fc_1.weight (h_dim, in_dim), fc_2.weight (1, h_dim),
    # xavier_normal_ weights, default-uniform biases.
    fc1_w = xavier_normal(k_w1, (h_dim, in_dim))
    fc2_w = xavier_normal(k_w2, (1, h_dim))
    fc1_b = jax.random.uniform(
        k_b1, (h_dim,), dtype=jnp.float32,
        minval=-1.0 / (in_dim ** 0.5), maxval=1.0 / (in_dim ** 0.5))
    fc2_b = jax.random.uniform(
        k_b2, (1,), dtype=jnp.float32,
        minval=-1.0 / (h_dim ** 0.5), maxval=1.0 / (h_dim ** 0.5))

    logits, probs = mlp_forward(x, fc1_w, fc1_b, fc2_w, fc2_b, block_b=128)
    jax.block_until_ready((logits, probs))

    # Pure-JAX reference (same math as the PyTorch module).
    h_ref = jnp.maximum(x @ fc1_w.T + fc1_b, 0.0)
    z_ref = h_ref @ fc2_w.T + fc2_b
    p_ref = jax.nn.sigmoid(z_ref)

    assert logits.shape == (B, 1) and probs.shape == (B, 1)
    assert jnp.allclose(logits, z_ref, atol=1e-5, rtol=1e-5), "logits mismatch"
    assert jnp.allclose(probs, p_ref, atol=1e-6, rtol=1e-5), "sigmoid mismatch"

    print("KERNEL_OK")
</pallas_src>

<mosaic_0001>
module attributes {stable_mosaic.version = 11 : i64} {
  func.func @mlp_kernel(%arg0: i32, %arg1: memref<128x32xf32, #tpu.memory_space<vmem>>, %arg2: memref<32x128xf32, #tpu.memory_space<vmem>>, %arg3: memref<1x128xf32, #tpu.memory_space<vmem>>, %arg4: memref<1x128xf32, #tpu.memory_space<vmem>>, %arg5: memref<1x1xf32, #tpu.memory_space<smem>>, %arg6: memref<128x2xf32, #tpu.memory_space<vmem>>) attributes {dimension_semantics = [#tpu.dimension_semantics<parallel>], iteration_bounds = array<i64: 2>, scalar_prefetch = 0 : i64, scratch_operands = 0 : i64, tpu.core_type = #tpu.core_type<tc>, window_params = [{transform_indices = @transform_0, window_bounds = array<i64: 128, 32>}, {pipeline_mode = #tpu.pipeline_mode<synchronous>, transform_indices = @transform_1, window_bounds = array<i64: 32, 128>}, {pipeline_mode = #tpu.pipeline_mode<synchronous>, transform_indices = @transform_2, window_bounds = array<i64: 1, 128>}, {pipeline_mode = #tpu.pipeline_mode<synchronous>, transform_indices = @transform_3, window_bounds = array<i64: 1, 128>}, {transform_indices = @transform_4, window_bounds = array<i64: 1, 1>}, {transform_indices = @transform_5, window_bounds = array<i64: 128, 2>}]} {
    %c0 = arith.constant 0 : index
    %c0_0 = arith.constant 0 : index
    %0 = vector.load %arg1[%c0, %c0_0] : memref<128x32xf32, #tpu.memory_space<vmem>>, vector<128x32xf32>
    %c0_1 = arith.constant 0 : index
    %c0_2 = arith.constant 0 : index
    %1 = vector.load %arg2[%c0_1, %c0_2] : memref<32x128xf32, #tpu.memory_space<vmem>>, vector<32x128xf32>
    %cst = arith.constant dense<0.000000e+00> : vector<128x128xf32>
    %2 = tpu.matmul %0, %1, %cst {dimension_numbers = #tpu.dot_dimension_numbers<[1], [0], [0], [1], [0, 0, 1, 1], [], []>} : vector<128x32xf32>, vector<32x128xf32>, vector<128x128xf32> -> vector<128x128xf32>
    %c0_3 = arith.constant 0 : index
    %c0_4 = arith.constant 0 : index
    %3 = vector.load %arg3[%c0_3, %c0_4] : memref<1x128xf32, #tpu.memory_space<vmem>>, vector<1x128xf32>
    %4 = vector.broadcast %3 : vector<1x128xf32> to vector<128x128xf32>
    %5 = arith.addf %2, %4 : vector<128x128xf32>
    %cst_5 = arith.constant 0.000000e+00 : f32
    %6 = vector.broadcast %cst_5 : f32 to vector<128x128xf32>
    %7 = arith.maximumf %5, %6 : vector<128x128xf32>
    %c0_6 = arith.constant 0 : index
    %c0_7 = arith.constant 0 : index
    %8 = vector.load %arg4[%c0_6, %c0_7] : memref<1x128xf32, #tpu.memory_space<vmem>>, vector<1x128xf32>
    %9 = vector.broadcast %8 : vector<1x128xf32> to vector<128x128xf32>
    %10 = arith.mulf %7, %9 : vector<128x128xf32>
    %cst_8 = arith.constant dense<0.000000e+00> : vector<128xf32>
    %11 = vector.multi_reduction <add>, %10, %cst_8 [1] : vector<128x128xf32> to vector<128xf32>
    %12 = vector.shape_cast %11 : vector<128xf32> to vector<128x1xf32>
    %c0_9 = arith.constant 0 : index
    %c0_10 = arith.constant 0 : index
    %13 = memref.load %arg5[%c0_9, %c0_10] : memref<1x1xf32, #tpu.memory_space<smem>>
    %14 = vector.broadcast %13 : f32 to vector<128x1xf32>
    %15 = arith.addf %12, %14 : vector<128x1xf32>
    %c0_11 = arith.constant 0 : index
    %c0_12 = arith.constant 0 : index
    %16 = vector.load %arg6[%c0_11, %c0_12] : memref<128x2xf32, #tpu.memory_space<vmem>>, vector<128x1xf32>
    tpu.vector_store %arg6[%c0_11, %c0_12], %15 {strides = array<i32>} : memref<128x2xf32, #tpu.memory_space<vmem>>, vector<128x1xf32>,
    %17 = arith.negf %15 : vector<128x1xf32>
    %18 = math.exp %17 : vector<128x1xf32>
    %cst_13 = arith.constant 1.000000e+00 : f32
    %19 = vector.broadcast %cst_13 : f32 to vector<128x1xf32>
    %20 = arith.addf %19, %18 : vector<128x1xf32>
    %21 = arith.divf %19, %20 : vector<128x1xf32>
    %c0_14 = arith.constant 0 : index
    %c1 = arith.constant 1 : index
    %22 = vector.load %arg6[%c0_14, %c1] : memref<128x2xf32, #tpu.memory_space<vmem>>, vector<128x1xf32>
    tpu.vector_store %arg6[%c0_14, %c1], %21 {strides = array<i32>} : memref<128x2xf32, #tpu.memory_space<vmem>>, vector<128x1xf32>,
    return
  }
  func.func @transform_0(%arg0: i32) -> (i32, i32) {
    %c0_i32 = arith.constant 0 : i32
    %c0_i32_0 = arith.constant 0 : i32
    return %arg0, %c0_i32 : i32, i32
  }
  func.func @transform_1(%arg0: i32) -> (i32, i32) {
    %c0_i32 = arith.constant 0 : i32
    %c0_i32_0 = arith.constant 0 : i32
    %c0_i32_1 = arith.constant 0 : i32
    return %c0_i32, %c0_i32_0 : i32, i32
  }
  func.func @transform_2(%arg0: i32) -> (i32, i32) {
    %c0_i32 = arith.constant 0 : i32
    %c0_i32_0 = arith.constant 0 : i32
    %c0_i32_1 = arith.constant 0 : i32
    return %c0_i32, %c0_i32_0 : i32, i32
  }
  func.func @transform_3(%arg0: i32) -> (i32, i32) {
    %c0_i32 = arith.constant 0 : i32
    %c0_i32_0 = arith.constant 0 : i32
    %c0_i32_1 = arith.constant 0 : i32
    return %c0_i32, %c0_i32_0 : i32, i32
  }
  func.func @transform_4(%arg0: i32) -> (i32, i32) {
    %c0_i32 = arith.constant 0 : i32
    %c0_i32_0 = arith.constant 0 : i32
    %c0_i32_1 = arith.constant 0 : i32
    return %c0_i32, %c0_i32_0 : i32, i32
  }
  func.func @transform_5(%arg0: i32) -> (i32, i32) {
    %c0_i32 = arith.constant 0 : i32
    %c0_i32_0 = arith.constant 0 : i32
    return %arg0, %c0_i32 : i32, i32
  }
}

</mosaic_0001>

<bundles_post_ra>
// kernel: tpu_custom_call.1
= control target key start
LH: loop header
LB: loop body
LE: loop exit
PB: predicated region body
PF: predicated region fallthrough
CT: control target
= control target key end

     0   :  { %s947_s20 = smov 0   ;;  %s1143_s0 = inlined_call_operand.vmem [shape: f32[256,32], index: 0, kind: input, shape index: {}]   ;;  %s1144_s1 = inlined_call_operand.vmem [shape: f32[32,128], index: 1, kind: input, shape index: {}]   ;;  %s1145_s2 = inlined_call_operand.vmem [shape: f32[1,128], index: 2, kind: input, shape index: {}]   ;;  %s1146_s3 = inlined_call_operand.vmem [shape: f32[1,128], index: 3, kind: input, shape index: {}]   ;;  %s1147_s4 = inlined_call_operand.<no memory space> [shape: f32[1,1], index: 4, kind: input, shape index: {}]   ;;  %s1148_s5 = inlined_call_operand.vmem [shape: f32[256,2], index: 5, kind: output, shape index: {}]  }
   0x1   :  { %10 = sst [smem:[#allocation2]] %s1147_s4 }
   0x2 LB: > { %s725_s21 = sadd.s32 4294967295, %s912_s20   ;;  %p729_p0 = scmp.ge.s32.totalorder %s912_s20, 1  ;;  %s912_s20 = sphi %s947_s20, %s16_s20  }
   0x3   : > { %p189_p1 = scmp.lt.s32.totalorder %s912_s20, 3 }
   0x5   : > { %p190_p2 = pnand %p729_p0, %p189_p1 }
   0x6   : > { %v245_v0 = vld [vmem:[%s1144_s1] sm:$0xff] (!%p190_p2)  ;;  %v246_v1 = vld [vmem:[%s1144_s1 + $0x8] sm:$0xff] (!%p190_p2)  ;;  %v247_v2 = vld [vmem:[%s1144_s1 + $0x10] sm:$0xff] (!%p190_p2)  ;;  %s730_s27 = sshll.u32 (!%p190_p2), %s725_s21, 4  ;;  %vm256_vm0 = vcmask (!%p190_p2), 261120   ;;  %s521_s13 = sld [smem:[#allocation2]] (!%p190_p2) }
   0x7   : > { %193 = sbr.rel (%p190_p2) target bundleno = 440 (0x1b8), region = 40  ;;  %v822_v3 = vpack.c.bf16 (!%p190_p2), %v246_v1, %v245_v0  ;;  %v248_v4 = vld [vmem:[%s1144_s1 + $0x18] sm:$0xff] (!%p190_p2)  ;;  %p218_p3 = scmp.lt.s32.totalorder (!%p190_p2), %s730_s27, 31  ;;  %v1012_v22 = vld [vmem:[%s1145_s2] ss:$0 sm:$0xff] (!%p190_p2)  ;;  %vm539_vm1 = vcmask (!%p190_p2), 7168  }
   0x8   : > { %v826_v5 = vpack.c.bf16 (!%p190_p2), %v248_v4, %v247_v2  ;;  %v1020_v30 = vld [vmem:[%s1146_s3] ss:$0 sm:$0xff] (!%p190_p2)  ;;  %vm652_vm2 = vcmask (!%p190_p2), 15368  }
   0x9   : > { %823 = vmatprep.subr.bf16.mxu0 (!%p190_p2), %v822_v3  ;;  %830 = vmatprep.subr.bf16.mxu1 (!%p190_p2), %v822_v3 }
   0xa   : > { %825 = vmatpush3.bf16.msra.mxu0 (!%p190_p2), %v822_v3  ;;  %832 = vmatpush3.bf16.msra.mxu1 (!%p190_p2), %v822_v3 }
   0xb   : > { %827 = vmatprep.subr.bf16.mxu0 (!%p190_p2), %v826_v5  ;;  %831 = vmatprep.subr.bf16.mxu1 (!%p190_p2), %v826_v5 }
   0xe   : > { %s1150_s27 = smov (!%p218_p3, %s730_s27), 31  ;;  %829 = vmatpush3.bf16.msra.mxu0 %v826_v5  ;;  %833 = vmatpush3.bf16.msra.mxu1 %v826_v5 }
   0xf   : > { %s731_s30 = sshll.u32 %s1150_s27, 3 }
  0x10   : > { %s975_s8 = scalar_lea.vmem %s1143_s0, %s731_s30  ;;  %s1058_s16 = scalar_lea.vmem %s1148_s5, %s731_s30 }
  0x11   : > { %v229_v6 = vld [vmem:[%s975_s8] sm:$0xff]  ;;  %v230_v8 = vld [vmem:[%s975_s8 + $0x8] sm:$0xff]  ;;  %v231_v10 = vld [vmem:[%s975_s8 + $0x10] sm:$0xff] }
  0x12   : > { %v237_v7 = vld [vmem:[%s975_s8 + $0x40] sm:$0xff]  ;;  %v238_v9 = vld [vmem:[%s975_s8 + $0x48] sm:$0xff]  ;;  %798 = vmatprep.mubr.msk.f32.mxu0 %vm256_vm0, %v229_v6  ;;  %v239_v11 = vld [vmem:[%s975_s8 + $0x50] sm:$0xff] }
  0x13   : > { %810 = vmatprep.mubr.msk.f32.mxu1 %vm256_vm0, %v237_v7  ;;  %799 = vmatmul.mubr.msk.f32.vlgmr.msra.gmra.mrb[0].mxu0 %vm256_vm0, %v230_v8  ;;  %v232_v12 = vld [vmem:[%s975_s8 + $0x18] sm:$0xff]  ;;  %v233_v14 = vld [vmem:[%s975_s8 + $0x20] sm:$0xff]  ;;  %v234_v16 = vld [vmem:[%s975_s8 + $0x28] sm:$0xff] }
  0x14   : > { %811 = vmatmul.mubr.msk.f32.vlgmr.msra.gmra.mrb[0].mxu1 %vm256_vm0, %v238_v9  ;;  %801 = vmatprep.mubr.msk.f32.mxu0 %vm256_vm0, %v231_v10  ;;  %v240_v13 = vld [vmem:[%s975_s8 + $0x58] sm:$0xff]  ;;  %v241_v15 = vld [vmem:[%s975_s8 + $0x60] sm:$0xff]  ;;  %v242_v17 = vld [vmem:[%s975_s8 + $0x68] sm:$0xff] }
  0x15   : > { %813 = vmatprep.mubr.msk.f32.mxu1 %vm256_vm0, %v239_v11  ;;  %v235_v18 = vld [vmem:[%s975_s8 + $0x30] sm:$0xff]  ;;  %v236_v20 = vld [vmem:[%s975_s8 + $0x38] sm:$0xff] }
  0x16   : > { %v243_v19 = vld [vmem:[%s975_s8 + $0x70] sm:$0xff]  ;;  %v244_v21 = vld [vmem:[%s975_s8 + $0x78] sm:$0xff] }
  0x17   : > { %802 = vmatmul.mubr.msk.f32.gmra.mrb[2].mxu0 %vm256_vm0, %v232_v12 }
  0x18   : > { %814 = vmatmul.mubr.msk.f32.gmra.mrb[2].mxu1 %vm256_vm0, %v240_v13  ;;  %804 = vmatprep.mubr.msk.f32.mxu0 %vm256_vm0, %v233_v14 }
  0x19   : > { %816 = vmatprep.mubr.msk.f32.mxu1 %vm256_vm0, %v241_v15 }
  0x1b   : > { %805 = vmatmul.mubr.msk.f32.gmra.mrb[4].mxu0 %vm256_vm0, %v234_v16 }
  0x1c   : > { %817 = vmatmul.mubr.msk.f32.gmra.mrb[4].mxu1 %vm256_vm0, %v242_v17  ;;  %807 = vmatprep.mubr.msk.f32.mxu0 %vm256_vm0, %v235_v18 }
  0x1d   : > { %819 = vmatprep.mubr.msk.f32.mxu1 %vm256_vm0, %v243_v19 }
  0x1f   : > { %808 = vmatmul.mubr.msk.f32.gmra.mrb[6].mxu0 %vm256_vm0, %v236_v20 }
  0x20   : > { %820 = vmatmul.mubr.msk.f32.gmra.mrb[6].mxu1 %vm256_vm0, %v244_v21 }
  0xe6   : > { %v800_v23 = vpop.f32.mrb[0].mxu0 }
  0xe7   : > { %v812_v24 = vpop.f32.mrb[0].mxu1  ;;  %v377_v25 = vadd.f32 %v800_v23, %v1012_v22  ;;  %v371_v27 = vpop.f32.mrb[1].mxu0 }
  0xe8   : > { %v417_v26 = vadd.f32 %v812_v24, %v1012_v22  ;;  %v411_v28 = vpop.f32.mrb[1].mxu1  ;;  %v372_v29 = vadd.f32 %v1012_v22, %v371_v27 }
  0xe9   : > { %v451_v31 = vmax.f32 %v377_v25, 0.0  ;;  %v412_v34 = vadd.f32 %v1012_v22, %v411_v28 }
  0xea   : > { %v459_v32 = vmax.f32 %v417_v26, 0.0  ;;  %v450_v33 = vmax.f32 %v372_v29, 0.0  ;;  %v803_v35 = vpop.f32.mrb[2].mxu0 }
  0xeb   : > { %v815_v36 = vpop.f32.mrb[2].mxu1  ;;  %v387_v37 = vadd.f32 %v803_v35, %v1012_v22  ;;  %v381_v38 = vpop.f32.mrb[3].mxu0  ;;  %v474_v41 = vmul.f32 %v1020_v30, %v451_v31  ;;  %v458_v45 = vmax.f32 %v412_v34, 0.0 }
  0xec   : > { %v482_v39 = vmul.f32 %v1020_v30, %v459_v32  ;;  %v427_v40 = vadd.f32 %v815_v36, %v1012_v22  ;;  %v421_v42 = vpop.f32.mrb[3].mxu1  ;;  %v382_v48 = vadd.f32 %v1012_v22, %v381_v38  ;;  %v473_v51 = vmul.f32 %v1020_v30, %v450_v33 }
  0xed   : > { %v453_v43 = vmax.f32 %v387_v37, 0.0  ;;  %491 = vadd.xlane.f32.xlu0 %v474_v41  ;;  %v422_v49 = vadd.f32 %v1012_v22, %v421_v42  ;;  %v481_v61 = vmul.f32 %v1020_v30, %v458_v45 }
  0xee   : > { %507 = vadd.xlane.f32.xlu1 %v482_v39  ;;  %v461_v44 = vmax.f32 %v427_v40, 0.0  ;;  %v806_v46 = vpop.f32.mrb[4].mxu0  ;;  %v452_v59 = vmax.f32 %v382_v48, 0.0 }
  0xef   : > { %v818_v47 = vpop.f32.mrb[4].mxu1  ;;  %v476_v50 = vmul.f32 %v1020_v30, %v453_v43  ;;  %v391_v52 = vpop.f32.mrb[5].mxu0  ;;  %v397_v54 = vadd.f32 %v806_v46, %v1012_v22  ;;  %v460_v60 = vmax.f32 %v422_v49, 0.0 }
  0xf0   : > { %v431_v53 = vpop.f32.mrb[5].mxu1  ;;  %v484_v55 = vmul.f32 %v1020_v30, %v461_v44  ;;  %v392_v56 = vadd.f32 %v1012_v22, %v391_v52  ;;  %v437_v0 = vadd.f32 %v818_v47, %v1012_v22  ;;  %v475_v4 = vmul.f32 %v1020_v30, %v452_v59 }
  0xf1   : > { %489 = vadd.xlane.f32.xlu0 %v473_v51  ;;  %v455_v1 = vmax.f32 %v397_v54, 0.0  ;;  %v432_v3 = vadd.f32 %v1012_v22, %v431_v53  ;;  %v483_v5 = vmul.f32 %v1020_v30, %v460_v60 }
  0xf2   : > { %495 = vadd.xlane.f32.xlu1 %v476_v50  ;;  %v809_v57 = vpop.f32.mrb[6].mxu0  ;;  %v454_v2 = vmax.f32 %v392_v56, 0.0  ;;  %v463_v6 = vmax.f32 %v437_v0, 0.0 }
  0xf3   : > { %v821_v58 = vpop.f32.mrb[6].mxu1  ;;  %v401_v62 = vpop.f32.mrb[7].mxu0  ;;  %v407_v7 = vadd.f32 %v809_v57, %v1012_v22  ;;  %v462_v8 = vmax.f32 %v432_v3, 0.0  ;;  %v478_v10 = vmul.f32 %v1020_v30, %v455_v1 }
  0xf4   : > { %v441_v63 = vpop.f32.mrb[7].mxu1  ;;  %v402_v9 = vadd.f32 %v1012_v22, %v401_v62  ;;  %v477_v11 = vmul.f32 %v1020_v30, %v454_v2  ;;  %v447_v12 = vadd.f32 %v821_v58, %v1012_v22  ;;  %v486_v13 = vmul.f32 %v1020_v30, %v463_v6 }
  0xf5   : > { %505 = vadd.xlane.f32.xlu0 %v481_v61  ;;  %v457_v14 = vmax.f32 %v407_v7, 0.0  ;;  %v442_v16 = vadd.f32 %v1012_v22, %v441_v63  ;;  %v485_v17 = vmul.f32 %v1020_v30, %v462_v8  ;;  %v1051_v22 = vstv %s521_s13 }
  0xf6   : > { %511 = vadd.xlane.f32.xlu1 %v484_v55  ;;  %v456_v15 = vmax.f32 %v402_v9, 0.0  ;;  %v465_v18 = vmax.f32 %v447_v12, 0.0 }
  0xf7   : > { %v464_v19 = vmax.f32 %v442_v16, 0.0  ;;  %v480_v20 = vmul.f32 %v1020_v30, %v457_v14 }
  0xf8   : > { %v479_v21 = vmul.f32 %v1020_v30, %v456_v15  ;;  %v488_v23 = vmul.f32 %v1020_v30, %v465_v18 }
  0xf9   : > { %509 = vadd.xlane.f32.xlu0 %v483_v5  ;;  %v487_v24 = vmul.f32 %v1020_v30, %v464_v19 }
  0xfa   : > { %493 = vadd.xlane.f32.xlu1 %v475_v4 }
  0xfd   : > { %497 = vadd.xlane.f32.xlu0 %v477_v11 }
  0xfe   : > { %499 = vadd.xlane.f32.xlu1 %v478_v10 }
 0x101   : > { %513 = vadd.xlane.f32.xlu0 %v485_v17 }
 0x102   : > { %515 = vadd.xlane.f32.xlu1 %v486_v13 }
 0x105   : > { %501 = vadd.xlane.f32.xlu0 %v479_v21 }
 0x106   : > { %503 = vadd.xlane.f32.xlu1 %v480_v20 }
 0x109   : > { %517 = vadd.xlane.f32.xlu0 %v487_v24 }
 0x10a   : > { %519 = vadd.xlane.f32.xlu1 %v488_v23 }
 0x17a   : > { %v492_v26 = vpop.xlane.xlu0 %491 }
 0x17b   : > { %v508_v25 = vpop.xlane.xlu1 %507  ;;  %v524_v28 = vadd.f32 %v1051_v22, %v492_v26 }
 0x17c   : > { %v532_v27 = vadd.f32 %v1051_v22, %v508_v25 }
 0x17d   : > { %541 = vst.msk [vmem:[%s1058_s16 + $0x8] sm:$0xff] %vm539_vm1, %v524_v28  ;;  %v753_v30 = vmul.f32 -1.442695, %v524_v28 }
 0x17e   : > { %549 = vst.msk [vmem:[%s1058_s16 + $0x48] sm:$0xff] %vm539_vm1, %v532_v27  ;;  %v761_v29 = vmul.f32 -1.442695, %v532_v27  ;;  %v490_v32 = vpop.xlane.xlu0 %489 }
 0x17f   : > { %v496_v31 = vpop.xlane.xlu1 %495  ;;  %v523_v34 = vadd.f32 %v1051_v22, %v490_v32 }
 0x180   : > { %842 = vpow2.f32 %v761_v29  ;;  %v526_v33 = vadd.f32 %v1051_v22, %v496_v31 }
 0x181   : > { %844 = vpow2.f32 %v753_v30  ;;  %540 = vst.msk [vmem:[%s1058_s16] sm:$0xff] %vm539_vm1, %v523_v34  ;;  %v752_v36 = vmul.f32 -1.442695, %v523_v34 }
 0x182   : > { %543 = vst.msk [vmem:[%s1058_s16 + $0x18] sm:$0xff] %vm539_vm1, %v526_v33  ;;  %v755_v35 = vmul.f32 -1.442695, %v526_v33  ;;  %v506_v38 = vpop.xlane.xlu0 %505 }
 0x183   : > { %v512_v37 = vpop.xlane.xlu1 %511  ;;  %v531_v40 = vadd.f32 %v1051_v22, %v506_v38 }
 0x184   : > { %846 = vpow2.f32 %v755_v35  ;;  %v534_v39 = vadd.f32 %v1051_v22, %v512_v37 }
 0x185   : > { %848 = vpow2.f32 %v752_v36  ;;  %548 = vst.msk [vmem:[%s1058_s16 + $0x40] sm:$0xff] %vm539_vm1, %v531_v40  ;;  %v760_v42 = vmul.f32 -1.442695, %v531_v40 }
 0x186   : > { %551 = vst.msk [vmem:[%s1058_s16 + $0x58] sm:$0xff] %vm539_vm1, %v534_v39  ;;  %v763_v41 = vmul.f32 -1.442695, %v534_v39  ;;  %v510_v44 = vpop.xlane.xlu0 %509 }
 0x187   : > { %v494_v43 = vpop.xlane.xlu1 %493  ;;  %v533_v46 = vadd.f32 %v1051_v22, %v510_v44 }
 0x188   : > { %850 = vpow2.f32 %v763_v41  ;;  %v525_v45 = vadd.f32 %v1051_v22, %v494_v43 }
 0x189   : > { %852 = vpow2.f32 %v760_v42  ;;  %550 = vst.msk [vmem:[%s1058_s16 + $0x50] sm:$0xff] %vm539_vm1, %v533_v46  ;;  %v762_v51 = vmul.f32 -1.442695, %v533_v46 }
 0x18a   : > { %v843_v47 = vpop.eup %842  ;;  %542 = vst.msk [vmem:[%s1058_s16 + $0x10] sm:$0xff] %vm539_vm1, %v525_v45  ;;  %v754_v48 = vmul.f32 -1.442695, %v525_v45  ;;  %v498_v53 = vpop.xlane.xlu0 %497 }
 0x18b   : > { %v845_v49 = vpop.eup %844  ;;  %v613_v50 = vadd.f32 1.0, %v843_v47  ;;  %v500_v52 = vpop.xlane.xlu1 %499  ;;  %v527_v56 = vadd.f32 %v1051_v22, %v498_v53 }
 0x18c   : > { %v605_v54 = vadd.f32 1.0, %v845_v49  ;;  %854 = vpow2.f32 %v754_v48  ;;  %v528_v55 = vadd.f32 %v1051_v22, %v500_v52 }
 0x18d   : > { %856 = vrcp.f32 %v613_v50  ;;  %544 = vst.msk [vmem:[%s1058_s16 + $0x20] sm:$0xff] %vm539_vm1, %v527_v56  ;;  %v756_v61 = vmul.f32 -1.442695, %v527_v56 }
 0x18e   : > { %v847_v57 = vpop.eup %846  ;;  %858 = vrcp.f32 %v605_v54  ;;  %545 = vst.msk [vmem:[%s1058_s16 + $0x28] sm:$0xff] %vm539_vm1, %v528_v55  ;;  %v757_v58 = vmul.f32 -1.442695, %v528_v55  ;;  %v514_v63 = vpop.xlane.xlu0 %513 }
 0x18f   : > { %v849_v59 = vpop.eup %848  ;;  %v607_v60 = vadd.f32 1.0, %v847_v57  ;;  %860 = vpow2.f32 %v762_v51  ;;  %v516_v62 = vpop.xlane.xlu1 %515  ;;  %v535_v2 = vadd.f32 %v1051_v22, %v514_v63 }
 0x190   : > { %v604_v0 = vadd.f32 1.0, %v849_v59  ;;  %862 = vpow2.f32 %v757_v58  ;;  %v536_v1 = vadd.f32 %v1051_v22, %v516_v62 }
 0x191   : > { %864 = vrcp.f32 %v607_v60  ;;  %552 = vst.msk [vmem:[%s1058_s16 + $0x60] sm:$0xff] %vm539_vm1, %v535_v2  ;;  %v764_v7 = vmul.f32 -1.442695, %v535_v2 }
 0x192   : > { %v851_v3 = vpop.eup %850  ;;  %866 = vrcp.f32 %v604_v0  ;;  %553 = vst.msk [vmem:[%s1058_s16 + $0x68] sm:$0xff] %vm539_vm1, %v536_v1  ;;  %v765_v4 = vmul.f32 -1.442695, %v536_v1  ;;  %v502_v9 = vpop.xlane.xlu0 %501 }
 0x193   : > { %v853_v5 = vpop.eup %852  ;;  %v615_v6 = vadd.f32 1.0, %v851_v3  ;;  %868 = vpow2.f32 %v756_v61  ;;  %v504_v8 = vpop.xlane.xlu1 %503  ;;  %v529_v12 = vadd.f32 %v1051_v22, %v502_v9 }
 0x194   : > { %v612_v10 = vadd.f32 1.0, %v853_v5  ;;  %870 = vpow2.f32 %v765_v4  ;;  %v530_v11 = vadd.f32 %v1051_v22, %v504_v8 }
 0x195   : > { %872 = vrcp.f32 %v615_v6  ;;  %546 = vst.msk [vmem:[%s1058_s16 + $0x30] sm:$0xff] %vm539_vm1, %v529_v12  ;;  %v758_v15 = vmul.f32 -1.442695, %v529_v12 }
 0x196   : > { %v855_v13 = vpop.eup %854  ;;  %874 = vrcp.f32 %v612_v10  ;;  %547 = vst.msk [vmem:[%s1058_s16 + $0x38] sm:$0xff] %vm539_vm1, %v530_v11  ;;  %v759_v14 = vmul.f32 -1.442695, %v530_v11  ;;  %v518_v19 = vpop.xlane.xlu0 %517 }
 0x197   : > { %v857_v16 = vpop.eup %856  ;;  %v606_v17 = vadd.f32 1.0, %v855_v13  ;;  %876 = vpow2.f32 %v764_v7  ;;  %v520_v18 = vpop.xlane.xlu1 %519  ;;  %v537_v23 = vadd.f32 %v1051_v22, %v518_v19 }
 0x198   : > { %v859_v20 = vpop.eup %858  ;;  %662 = vst.msk [vmem:[%s1058_s16 + $0x48] sm:$0xff] %vm652_vm2, %v857_v16  ;;  %878 = vpow2.f32 %v759_v14  ;;  %v538_v21 = vadd.f32 %v1051_v22, %v520_v18 }
 0x199   : > { %v861_v24 = vpop.eup %860  ;;  %654 = vst.msk [vmem:[%s1058_s16 + $0x8] sm:$0xff] %vm652_vm2, %v859_v20  ;;  %880 = vrcp.f32 %v606_v17  ;;  %v766_v30 = vmul.f32 -1.442695, %v537_v23 }
 0x19a   : > { %v863_v25 = vpop.eup %862  ;;  %v614_v26 = vadd.f32 1.0, %v861_v24  ;;  %882 = vpow2.f32 %v758_v15  ;;  %555 = vst.msk [vmem:[%s1058_s16 + $0x78] sm:$0xff] %vm539_vm1, %v538_v21  ;;  %v767_v27 = vmul.f32 -1.442695, %v538_v21  ;;  %554 = vst.msk [vmem:[%s1058_s16 + $0x70] sm:$0xff] %vm539_vm1, %v537_v23 }
 0x19b   : > { %v865_v28 = vpop.eup %864  ;;  %v609_v29 = vadd.f32 1.0, %v863_v25 }
 0x19c   : > { %v867_v31 = vpop.eup %866  ;;  %656 = vst.msk [vmem:[%s1058_s16 + $0x18] sm:$0xff] %vm652_vm2, %v865_v28  ;;  %884 = vrcp.f32 %v614_v26 }
 0x19d   : > { %v869_v22 = vpop.eup %868  ;;  %653 = vst.msk [vmem:[%s1058_s16] sm:$0xff] %vm652_vm2, %v867_v31  ;;  %886 = vrcp.f32 %v609_v29 }
 0x19e   : > { %v871_v32 = vpop.eup %870  ;;  %v608_v33 = vadd.f32 1.0, %v869_v22  ;;  %888 = vpow2.f32 %v767_v27 }
 0x19f   : > { %v873_v34 = vpop.eup %872  ;;  %v617_v35 = vadd.f32 1.0, %v871_v32  ;;  %890 = vpow2.f32 %v766_v30 }
 0x1a0   : > { %v875_v36 = vpop.eup %874  ;;  %664 = vst.msk [vmem:[%s1058_s16 + $0x58] sm:$0xff] %vm652_vm2, %v873_v34  ;;  %892 = vrcp.f32 %v608_v33 }
 0x1a1   : > { %v877_v37 = vpop.eup %876  ;;  %661 = vst.msk [vmem:[%s1058_s16 + $0x40] sm:$0xff] %vm652_vm2, %v875_v36  ;;  %894 = vrcp.f32 %v617_v35 }
 0x1a2   : > { %v879_v38 = vpop.eup %878  ;;  %v616_v39 = vadd.f32 1.0, %v877_v37 }
 0x1a3   : > { %v881_v40 = vpop.eup %880  ;;  %v611_v41 = vadd.f32 1.0, %v879_v38 }
 0x1a4   : > { %v883_v42 = vpop.eup %882  ;;  %655 = vst.msk [vmem:[%s1058_s16 + $0x10] sm:$0xff] %vm652_vm2, %v881_v40  ;;  %896 = vrcp.f32 %v616_v39 }
 0x1a5   : > { %898 = vrcp.f32 %v611_v41  ;;  %v610_v43 = vadd.f32 1.0, %v883_v42 }
 0x1a6   : > { %v885_v44 = vpop.eup %884 }
 0x1a7   : > { %v887_v45 = vpop.eup %886  ;;  %663 = vst.msk [vmem:[%s1058_s16 + $0x50] sm:$0xff] %vm652_vm2, %v885_v44  ;;  %900 = vrcp.f32 %v610_v43 }
 0x1a8   : > { %v889_v46 = vpop.eup %888  ;;  %658 = vst.msk [vmem:[%s1058_s16 + $0x28] sm:$0xff] %vm652_vm2, %v887_v45 }
 0x1a9   : > { %v891_v47 = vpop.eup %890  ;;  %v619_v48 = vadd.f32 1.0, %v889_v46 }
 0x1aa   : > { %v893_v49 = vpop.eup %892  ;;  %v618_v50 = vadd.f32 1.0, %v891_v47 }
 0x1ab   : > { %v895_v51 = vpop.eup %894  ;;  %657 = vst.msk [vmem:[%s1058_s16 + $0x20] sm:$0xff] %vm652_vm2, %v893_v49  ;;  %902 = vrcp.f32 %v619_v48 }
 0x1ac   : > { %666 = vst.msk [vmem:[%s1058_s16 + $0x68] sm:$0xff] %vm652_vm2, %v895_v51  ;;  %904 = vrcp.f32 %v618_v50 }
 0x1ae   : > { %v897_v52 = vpop.eup %896 }
 0x1af   : > { %v899_v53 = vpop.eup %898  ;;  %665 = vst.msk [vmem:[%s1058_s16 + $0x60] sm:$0xff] %vm652_vm2, %v897_v52 }
 0x1b0   : > { %660 = vst.msk [vmem:[%s1058_s16 + $0x38] sm:$0xff] %vm652_vm2, %v899_v53 }
 0x1b1   : > { %v901_v54 = vpop.eup %900 }
 0x1b2   : > { %659 = vst.msk [vmem:[%s1058_s16 + $0x30] sm:$0xff] %vm652_vm2, %v901_v54 }
 0x1b5   : > { %v903_v55 = vpop.eup %902 }
 0x1b6   : > { %v905_v56 = vpop.eup %904  ;;  %668 = vst.msk [vmem:[%s1058_s16 + $0x78] sm:$0xff] %vm652_vm2, %v903_v55 }
 0x1b7   : > { %667 = vst.msk [vmem:[%s1058_s16 + $0x70] sm:$0xff] %vm652_vm2, %v905_v56 }
 0x1b8 PF: > { %s16_s20 = sadd.s32 1, %s912_s20  }
 0x1b9   : > { %p13_p4 = scmp.ge.s32.totalorder %s16_s20, 4  }
 0x1bb   :  { %15 = sbr.rel (!%p13_p4) target bundleno = 2 (0x2), region = 70 }

</bundles_post_ra>
